<compile_context>
chip_gen: v6e
topology: v6e:2x2x1
jax: 0.10.0
libtpu: 0.0.40
codegen_flags: <defaults>
</compile_context>

<pallas_src>
import functools

import jax
import jax.numpy as jnp
from jax.experimental import pallas as pl
from jax.experimental.pallas import tpu as pltpu

_MASK_VALUE = -1e30  # large finite negative: fully-masked rows stay NaN-free
                     # (reference with -inf would give NaN for a fully-masked row)


def _mha_kernel(*refs, n_head, has_mask, return_attn):
    # refs = (inputs..., outputs..., scratch...)
    i = 0
    q_ref, k_ref, v_ref = refs[i], refs[i + 1], refs[i + 2]
    i += 3
    mask_ref = None
    if has_mask:
        mask_ref = refs[i]
        i += 1
    wq_ref, wk_ref, wv_ref, wo_ref = refs[i:i + 4]
    i += 4
    out_ref = refs[i]
    i += 1
    attn_ref = None
    if return_attn:
        attn_ref = refs[i]
        i += 1
    k_scr, v_scr, cat_scr = refs[i:i + 3]

    qi = pl.program_id(1)

    # K/V projections are query-tile invariant: compute them once per batch element
    # (qi == 0) into persistent VMEM scratch and reuse on every later query tile.
    @pl.when(qi == 0)
    def _():
        k_scr[...] = jnp.dot(k_ref[0], wk_ref[...], preferred_element_type=jnp.float32)
        v_scr[...] = jnp.dot(v_ref[0], wv_ref[...], preferred_element_type=jnp.float32)

    # Head-fused, lane-dense query projection (1/sqrt(D) already folded into wq).
    q_all = jnp.dot(q_ref[0], wq_ref[...], preferred_element_type=jnp.float32)  # (Sq, H)

    if mask_ref is not None:
        m = mask_ref[0].astype(jnp.int32) != 0  # (Sq, S) bool

    H = q_all.shape[-1]
    D = H // n_head

    for h in range(n_head):                       # static loop over heads
        qh = q_all[:, h * D:(h + 1) * D]          # (Sq, D)
        kh = k_scr[:, h * D:(h + 1) * D]          # (S,  D)
        vh = v_scr[:, h * D:(h + 1) * D]          # (S,  D)

        # q @ k^T via dot_general (no explicit in-kernel transpose).
        s = jax.lax.dot_general(qh, kh, (((1,), (1,)), ((), ())),
                                preferred_element_type=jnp.float32)  # (Sq, S)
        if mask_ref is not None:
            s = jnp.where(m, _MASK_VALUE, s)

        s_max = jnp.max(s, axis=-1, keepdims=True)
        p = jnp.exp(s - s_max)
        denom = jnp.sum(p, axis=-1, keepdims=True)
        # approx=False keeps exact 1/x (approx=True perturbs results past 1e-5 tolerance).
        attn = p * pl.reciprocal(denom, approx=False)

        if attn_ref is not None:
            attn_ref[h, 0] = attn.astype(attn_ref.dtype)

        # Per-head write into the concat scratch instead of an in-register concatenate:
        # keeps only one head's (Sq, D) tile live at a time.
        cat_scr[:, h * D:(h + 1) * D] = jnp.dot(attn, vh,
                                                preferred_element_type=jnp.float32)

    # Fused output projection (o_w), lane-dense (Sq, H) store.
    out_ref[0] = jnp.dot(cat_scr[...], wo_ref[...],
                         preferred_element_type=jnp.float32).astype(out_ref.dtype)


def multi_head_attention(query, key, value, params, mask=None, return_attention=True):
    """params: 'wq','wk','wv' of shape (n_head, D, H) (PyTorch out,in per head), 'wo' (H, H)."""
    B, S, H = query.shape
    n_head, D, _ = params["wq"].shape
    assert n_head * D == H
    scale = 1.0 / float(D) ** 0.5

    # --- one-time wrapper-side weight plumbing (hoisted out of the kernel) ---
    def fuse_heads(w):
        # (n_head, D, H) -> (H, n_head*D): column h*D+d == w[h].T[:, d], so
        # x @ fused == concat_h(x @ w[h].T)  (head-major, matching torch.cat order).
        return jnp.transpose(w, (2, 0, 1)).reshape(H, n_head * D)

    wq_cat = fuse_heads(params["wq"]) * jnp.float32(scale)   # fold 1/sqrt(D) into q proj
    wk_cat = fuse_heads(params["wk"])
    wv_cat = fuse_heads(params["wv"])
    wo_t = params["wo"].T                                    # (H_in, H_out): out = x @ wo_t

    has_mask = mask is not None

    # --- VMEM-budget-driven query-tile (Sq) selection -----------------------------------
    BUDGET = 48 * 2**20  # target footprint; fits v7x's 64 MiB physical VMEM with headroom

    def est_vmem(sq, kv_bufs):
        f32 = 4
        b = 2 * sq * H * f32                      # q tile (double-buffered)
        b += kv_bufs * 2 * S * H * f32            # K + V input tiles
        if has_mask:
            b += 2 * sq * S                       # int8 mask tile (double-buffered)
        b += 4 * H * H * f32                      # 4 weight tiles (single-buffered)
        b += 2 * sq * H * f32                     # output tile (double-buffered)
        if return_attention:
            b += 2 * n_head * sq * S * f32        # attention-prob tile (double-buffered)
        b += 2 * S * H * f32                      # projected-K/V scratch
        b += sq * H * f32                         # head-concat scratch
        return b

    # Candidate tile sizes: divisors of S that are multiples of 8, plus S itself.
    cands = sorted({c for c in (8, 16, 32, 64, 128, 256, 512, S)
                    if c <= S and S % c == 0}, reverse=True)
    Sq, kv_bufs = cands[-1], 1   # fallback: smallest tile, single-buffered K/V
    for c in cands:
        if est_vmem(c, 2) <= BUDGET:
            Sq, kv_bufs = c, 2
            break
        if est_vmem(c, 1) <= BUDGET:
            Sq, kv_bufs = c, 1      # K/V block index changes once per batch -> cheap trade
            break
    # TODO(synk): if even the fallback exceeds BUDGET (very long S), flash-style K/V tiling
    #             with an online softmax is required; omitted here.
    num_q = S // Sq

    # Raise the scoped-VMEM limit (v5e default is only ~16 MiB) to what this kernel needs.
    vmem_limit = int(max(est_vmem(Sq, kv_bufs) + (4 << 20), 32 << 20))

    kernel = functools.partial(_mha_kernel, n_head=n_head, has_mask=has_mask,
                               return_attn=return_attention)

    kv_kwargs = {} if kv_bufs == 2 else {"pipeline_mode": pl.Buffered(1)}
    in_specs = [
        pl.BlockSpec((1, Sq, H), lambda b, qi: (b, qi, 0)),                 # query tile
        pl.BlockSpec((1, S, H), lambda b, qi: (b, 0, 0), **kv_kwargs),      # key (full S)
        pl.BlockSpec((1, S, H), lambda b, qi: (b, 0, 0), **kv_kwargs),      # value (full S)
    ]
    inputs = [query, key, value]
    if has_mask:
        in_specs.append(pl.BlockSpec((1, Sq, S), lambda b, qi: (b, qi, 0)))  # int8 mask
        inputs.append(jnp.asarray(mask).astype(jnp.int8))
    # Grid-invariant weights: single-buffered (no useless second buffer).
    w_spec = lambda: pl.BlockSpec((H, H), lambda b, qi: (0, 0),
                                  pipeline_mode=pl.Buffered(1))
    in_specs += [w_spec(), w_spec(), w_spec(), w_spec()]
    inputs += [wq_cat, wk_cat, wv_cat, wo_t]

    if return_attention:
        out_shape = (jax.ShapeDtypeStruct((B, S, H), jnp.float32),
                     jax.ShapeDtypeStruct((n_head, B, S, S), jnp.float32))
        out_specs = [pl.BlockSpec((1, Sq, H), lambda b, qi: (b, qi, 0)),
                     pl.BlockSpec((n_head, 1, Sq, S), lambda b, qi: (0, b, qi, 0))]
    else:
        out_shape = jax.ShapeDtypeStruct((B, S, H), jnp.float32)
        out_specs = pl.BlockSpec((1, Sq, H), lambda b, qi: (b, qi, 0))

    result = pl.pallas_call(
        kernel,
        out_shape=out_shape,
        grid_spec=pltpu.PrefetchScalarGridSpec(
            num_scalar_prefetch=0,
            grid=(B, num_q),
            in_specs=in_specs,
            out_specs=out_specs,
            scratch_shapes=[
                pltpu.VMEM((S, H), jnp.float32),    # projected K (persists across qi)
                pltpu.VMEM((S, H), jnp.float32),    # projected V (persists across qi)
                pltpu.VMEM((Sq, H), jnp.float32),   # per-head concat buffer
            ],
        ),
        compiler_params=pltpu.CompilerParams(
            # qi axis carries scratch state (K/V projections) -> must be "arbitrary".
            dimension_semantics=("parallel", "arbitrary"),
            vmem_limit_bytes=vmem_limit,
        ),
    )(*inputs)

    # TODO(synk): dropout omitted (inference mode / identity).
    if return_attention:
        out, attn = result
        return out, attn
    return result


def _reference(query, key, value, params, mask=None):
    """Pure-JAX reference matching the PyTorch module (eval mode)."""
    n_head, D, _ = params["wq"].shape
    scale = 1.0 / jnp.sqrt(jnp.float32(D))
    wvs, attns = [], []
    for h in range(n_head):
        q = query @ params["wq"][h].T
        k = key @ params["wk"][h].T
        v = value @ params["wv"][h].T
        s = jnp.einsum("bsd,btd->bst", q, k) * scale
        if mask is not None:
            s = jnp.where(mask, -jnp.inf, s)
        a = jax.nn.softmax(s, axis=-1)
        wvs.append(a @ v)
        attns.append(a)
    concat = jnp.concatenate(wvs, axis=-1)
    out = concat @ params["wo"].T
    return out, jnp.stack(attns, axis=0)


if __name__ == "__main__":
    # small, deterministic config: batch=2, seq=8, hidden_dim=32, n_head=4 -> attn_dim=8
    B, S, H, n_head = 2, 8, 32, 4
    D = H // n_head

    key0 = jax.random.PRNGKey(0)
    kq, kk, kv, ko, kx1, kx2, kx3 = jax.random.split(key0, 7)

    params = {
        "wq": jax.random.normal(kq, (n_head, D, H), jnp.float32) * 0.1,
        "wk": jax.random.normal(kk, (n_head, D, H), jnp.float32) * 0.1,
        "wv": jax.random.normal(kv, (n_head, D, H), jnp.float32) * 0.1,
        "wo": jax.random.normal(ko, (H, H), jnp.float32) * 0.1,
    }

    query = jax.random.normal(kx1, (B, S, H), jnp.float32)
    key_ = jax.random.normal(kx2, (B, S, H), jnp.float32)
    value = jax.random.normal(kx3, (B, S, H), jnp.float32)

    # --- maskless path ---
    out, attn = multi_head_attention(query, key_, value, params, mask=None)
    out = jax.block_until_ready(out)
    attn = jax.block_until_ready(attn)
    ref_out, ref_attn = _reference(query, key_, value, params, mask=None)
    assert jnp.allclose(out, ref_out, atol=1e-5, rtol=1e-5)
    assert jnp.allclose(attn, ref_attn, atol=1e-5, rtol=1e-5)

    # --- masked path (causal mask, no fully-masked rows) ---
    causal = jnp.broadcast_to(jnp.triu(jnp.ones((S, S), jnp.bool_), k=1), (B, S, S))
    out_m, attn_m = multi_head_attention(query, key_, value, params, mask=causal)
    out_m = jax.block_until_ready(out_m)
    attn_m = jax.block_until_ready(attn_m)
    ref_out_m, ref_attn_m = _reference(query, key_, value, params, mask=causal)
    assert jnp.allclose(out_m, ref_out_m, atol=1e-5, rtol=1e-5)
    assert jnp.allclose(attn_m, ref_attn_m, atol=1e-5, rtol=1e-5)

    # --- output-only path (skips the (n_head,B,S,S) attention-prob HBM writes) ---
    out_only = multi_head_attention(query, key_, value, params, mask=causal,
                                    return_attention=False)
    out_only = jax.block_until_ready(out_only)
    assert jnp.allclose(out_only, ref_out_m, atol=1e-5, rtol=1e-5)

    print("KERNEL_OK")
</pallas_src>

<mosaic_0001>
module attributes {stable_mosaic.version = 11 : i64} {
  func.func @_mha_kernel(%arg0: i32, %arg1: i32, %arg2: memref<1x8x32xf32, #tpu.memory_space<vmem>>, %arg3: memref<1x8x32xf32, #tpu.memory_space<vmem>>, %arg4: memref<1x8x32xf32, #tpu.memory_space<vmem>>, %arg5: memref<32x32xf32, #tpu.memory_space<vmem>>, %arg6: memref<32x32xf32, #tpu.memory_space<vmem>>, %arg7: memref<32x32xf32, #tpu.memory_space<vmem>>, %arg8: memref<32x32xf32, #tpu.memory_space<vmem>>, %arg9: memref<1x8x32xf32, #tpu.memory_space<vmem>>, %arg10: memref<4x1x8x8xf32, #tpu.memory_space<vmem>>, %arg11: memref<8x32xf32, #tpu.memory_space<vmem>>, %arg12: memref<8x32xf32, #tpu.memory_space<vmem>>, %arg13: memref<8x32xf32, #tpu.memory_space<vmem>>) attributes {dimension_semantics = [#tpu.dimension_semantics<parallel>, #tpu.dimension_semantics<arbitrary>], iteration_bounds = array<i64: 2, 1>, scalar_prefetch = 0 : i64, scratch_operands = 3 : i64, tpu.core_type = #tpu.core_type<tc>, window_params = [{transform_indices = @transform_0, window_bounds = array<i64: 1, 8, 32>}, {transform_indices = @transform_1, window_bounds = array<i64: 1, 8, 32>}, {transform_indices = @transform_2, window_bounds = array<i64: 1, 8, 32>}, {pipeline_mode = #tpu.pipeline_mode<synchronous>, transform_indices = @transform_3, window_bounds = array<i64: 32, 32>}, {pipeline_mode = #tpu.pipeline_mode<synchronous>, transform_indices = @transform_4, window_bounds = array<i64: 32, 32>}, {pipeline_mode = #tpu.pipeline_mode<synchronous>, transform_indices = @transform_5, window_bounds = array<i64: 32, 32>}, {pipeline_mode = #tpu.pipeline_mode<synchronous>, transform_indices = @transform_6, window_bounds = array<i64: 32, 32>}, {transform_indices = @transform_7, window_bounds = array<i64: 1, 8, 32>}, {transform_indices = @transform_8, window_bounds = array<i64: 4, 1, 8, 8>}]} {
    %c0_i32 = arith.constant 0 : i32
    %0 = arith.cmpi eq, %arg1, %c0_i32 : i32
    %1 = arith.extui %0 : i1 to i32
    %c0_i32_0 = arith.constant 0 : i32
    %2 = arith.cmpi ne, %1, %c0_i32_0 : i32
    scf.if %2 {
      %c0_63 = arith.constant 0 : index
      %c0_64 = arith.constant 0 : index
      %c0_65 = arith.constant 0 : index
      %89 = vector.load %arg3[%c0_63, %c0_64, %c0_65] : memref<1x8x32xf32, #tpu.memory_space<vmem>>, vector<1x8x32xf32>
      %90 = vector.shape_cast %89 : vector<1x8x32xf32> to vector<8x32xf32>
      %c0_66 = arith.constant 0 : index
      %c0_67 = arith.constant 0 : index
      %91 = vector.load %arg6[%c0_66, %c0_67] : memref<32x32xf32, #tpu.memory_space<vmem>>, vector<32x32xf32>
      %cst_68 = arith.constant dense<0.000000e+00> : vector<8x32xf32>
      %92 = tpu.matmul %90, %91, %cst_68 {dimension_numbers = #tpu.dot_dimension_numbers<[1], [0], [0], [1], [0, 0, 1, 1], [], []>} : vector<8x32xf32>, vector<32x32xf32>, vector<8x32xf32> -> vector<8x32xf32>
      %c0_69 = arith.constant 0 : index
      %c0_70 = arith.constant 0 : index
      %93 = vector.load %arg11[%c0_69, %c0_70] : memref<8x32xf32, #tpu.memory_space<vmem>>, vector<8x32xf32>
      tpu.vector_store %arg11[%c0_69, %c0_70], %92 {strides = array<i32>} : memref<8x32xf32, #tpu.memory_space<vmem>>, vector<8x32xf32>,
      %c0_71 = arith.constant 0 : index
      %c0_72 = arith.constant 0 : index
      %c0_73 = arith.constant 0 : index
      %94 = vector.load %arg4[%c0_71, %c0_72, %c0_73] : memref<1x8x32xf32, #tpu.memory_space<vmem>>, vector<1x8x32xf32>
      %95 = vector.shape_cast %94 : vector<1x8x32xf32> to vector<8x32xf32>
      %c0_74 = arith.constant 0 : index
      %c0_75 = arith.constant 0 : index
      %96 = vector.load %arg7[%c0_74, %c0_75] : memref<32x32xf32, #tpu.memory_space<vmem>>, vector<32x32xf32>
      %cst_76 = arith.constant dense<0.000000e+00> : vector<8x32xf32>
      %97 = tpu.matmul %95, %96, %cst_76 {dimension_numbers = #tpu.dot_dimension_numbers<[1], [0], [0], [1], [0, 0, 1, 1], [], []>} : vector<8x32xf32>, vector<32x32xf32>, vector<8x32xf32> -> vector<8x32xf32>
      %c0_77 = arith.constant 0 : index
      %c0_78 = arith.constant 0 : index
      %98 = vector.load %arg12[%c0_77, %c0_78] : memref<8x32xf32, #tpu.memory_space<vmem>>, vector<8x32xf32>
      tpu.vector_store %arg12[%c0_77, %c0_78], %97 {strides = array<i32>} : memref<8x32xf32, #tpu.memory_space<vmem>>, vector<8x32xf32>,
    } else {
    }
    %c0 = arith.constant 0 : index
    %c0_1 = arith.constant 0 : index
    %c0_2 = arith.constant 0 : index
    %3 = vector.load %arg2[%c0, %c0_1, %c0_2] : memref<1x8x32xf32, #tpu.memory_space<vmem>>, vector<1x8x32xf32>
    %4 = vector.shape_cast %3 : vector<1x8x32xf32> to vector<8x32xf32>
    %c0_3 = arith.constant 0 : index
    %c0_4 = arith.constant 0 : index
    %5 = vector.load %arg5[%c0_3, %c0_4] : memref<32x32xf32, #tpu.memory_space<vmem>>, vector<32x32xf32>
    %cst = arith.constant dense<0.000000e+00> : vector<8x32xf32>
    %6 = tpu.matmul %4, %5, %cst {dimension_numbers = #tpu.dot_dimension_numbers<[1], [0], [0], [1], [0, 0, 1, 1], [], []>} : vector<8x32xf32>, vector<32x32xf32>, vector<8x32xf32> -> vector<8x32xf32>
    %7 = vector.extract_strided_slice %6 {offsets = [0, 0], sizes = [8, 8], strides = [1, 1]} : vector<8x32xf32> to vector<8x8xf32>
    %c0_5 = arith.constant 0 : index
    %c0_6 = arith.constant 0 : index
    %8 = vector.load %arg11[%c0_5, %c0_6] : memref<8x32xf32, #tpu.memory_space<vmem>>, vector<8x8xf32>
    %c0_7 = arith.constant 0 : index
    %c0_8 = arith.constant 0 : index
    %9 = vector.load %arg12[%c0_7, %c0_8] : memref<8x32xf32, #tpu.memory_space<vmem>>, vector<8x8xf32>
    %cst_9 = arith.constant dense<0.000000e+00> : vector<8x8xf32>
    %10 = tpu.matmul %7, %8, %cst_9 {dimension_numbers = #tpu.dot_dimension_numbers<[1], [1], [0], [0], [0, 0, 1, 0], [], []>} : vector<8x8xf32>, vector<8x8xf32>, vector<8x8xf32> -> vector<8x8xf32>
    %cst_10 = arith.constant dense<0xFF800000> : vector<8xf32>
    %11 = vector.multi_reduction <maximumf>, %10, %cst_10 [1] : vector<8x8xf32> to vector<8xf32>
    %12 = vector.shape_cast %11 : vector<8xf32> to vector<8x1xf32>
    %13 = vector.broadcast %12 : vector<8x1xf32> to vector<8x8xf32>
    %14 = arith.subf %10, %13 : vector<8x8xf32>
    %15 = math.exp %14 : vector<8x8xf32>
    %cst_11 = arith.constant dense<0.000000e+00> : vector<8xf32>
    %16 = vector.multi_reduction <add>, %15, %cst_11 [1] : vector<8x8xf32> to vector<8xf32>
    %17 = vector.shape_cast %16 : vector<8xf32> to vector<8x1xf32>
    %18 = tpu.reciprocal %17 : vector<8x1xf32> -> vector<8x1xf32>
    %19 = vector.broadcast %18 : vector<8x1xf32> to vector<8x8xf32>
    %20 = arith.mulf %15, %19 : vector<8x8xf32>
    %c0_12 = arith.constant 0 : index
    %c0_13 = arith.constant 0 : index
    %c0_14 = arith.constant 0 : index
    %c0_15 = arith.constant 0 : index
    %21 = vector.load %arg10[%c0_12, %c0_13, %c0_14, %c0_15] : memref<4x1x8x8xf32, #tpu.memory_space<vmem>>, vector<1x1x8x8xf32>
    %22 = vector.shape_cast %21 : vector<1x1x8x8xf32> to vector<8x8xf32>
    %23 = vector.shape_cast %20 : vector<8x8xf32> to vector<1x1x8x8xf32>
    tpu.vector_store %arg10[%c0_12, %c0_13, %c0_14, %c0_15], %23 {strides = array<i32>} : memref<4x1x8x8xf32, #tpu.memory_space<vmem>>, vector<1x1x8x8xf32>,
    %cst_16 = arith.constant dense<0.000000e+00> : vector<8x8xf32>
    %24 = tpu.matmul %20, %9, %cst_16 {dimension_numbers = #tpu.dot_dimension_numbers<[1], [0], [0], [1], [0, 0, 1, 1], [], []>} : vector<8x8xf32>, vector<8x8xf32>, vector<8x8xf32> -> vector<8x8xf32>
    %c0_17 = arith.constant 0 : index
    %c0_18 = arith.constant 0 : index
    %25 = vector.load %arg13[%c0_17, %c0_18] : memref<8x32xf32, #tpu.memory_space<vmem>>, vector<8x8xf32>
    tpu.vector_store %arg13[%c0_17, %c0_18], %24 {strides = array<i32>} : memref<8x32xf32, #tpu.memory_space<vmem>>, vector<8x8xf32>,
    %26 = vector.extract_strided_slice %6 {offsets = [0, 8], sizes = [8, 8], strides = [1, 1]} : vector<8x32xf32> to vector<8x8xf32>
    %c0_19 = arith.constant 0 : index
    %c8 = arith.constant 8 : index
    %27 = vector.load %arg11[%c0_19, %c8] : memref<8x32xf32, #tpu.memory_space<vmem>>, vector<8x8xf32>
    %c0_20 = arith.constant 0 : index
    %c8_21 = arith.constant 8 : index
    %28 = vector.load %arg12[%c0_20, %c8_21] : memref<8x32xf32, #tpu.memory_space<vmem>>, vector<8x8xf32>
    %cst_22 = arith.constant dense<0.000000e+00> : vector<8x8xf32>
    %29 = tpu.matmul %26, %27, %cst_22 {dimension_numbers = #tpu.dot_dimension_numbers<[1], [1], [0], [0], [0, 0, 1, 0], [], []>} : vector<8x8xf32>, vector<8x8xf32>, vector<8x8xf32> -> vector<8x8xf32>
    %cst_23 = arith.constant dense<0xFF800000> : vector<8xf32>
    %30 = vector.multi_reduction <maximumf>, %29, %cst_23 [1] : vector<8x8xf32> to vector<8xf32>
    %31 = vector.shape_cast %30 : vector<8xf32> to vector<8x1xf32>
    %32 = vector.broadcast %31 : vector<8x1xf32> to vector<8x8xf32>
    %33 = arith.subf %29, %32 : vector<8x8xf32>
    %34 = math.exp %33 : vector<8x8xf32>
    %cst_24 = arith.constant dense<0.000000e+00> : vector<8xf32>
    %35 = vector.multi_reduction <add>, %34, %cst_24 [1] : vector<8x8xf32> to vector<8xf32>
    %36 = vector.shape_cast %35 : vector<8xf32> to vector<8x1xf32>
    %37 = tpu.reciprocal %36 : vector<8x1xf32> -> vector<8x1xf32>
    %38 = vector.broadcast %37 : vector<8x1xf32> to vector<8x8xf32>
    %39 = arith.mulf %34, %38 : vector<8x8xf32>
    %c1 = arith.constant 1 : index
    %c0_25 = arith.constant 0 : index
    %c0_26 = arith.constant 0 : index
    %c0_27 = arith.constant 0 : index
    %40 = vector.load %arg10[%c1, %c0_25, %c0_26, %c0_27] : memref<4x1x8x8xf32, #tpu.memory_space<vmem>>, vector<1x1x8x8xf32>
    %41 = vector.shape_cast %40 : vector<1x1x8x8xf32> to vector<8x8xf32>
    %42 = vector.shape_cast %39 : vector<8x8xf32> to vector<1x1x8x8xf32>
    tpu.vector_store %arg10[%c1, %c0_25, %c0_26, %c0_27], %42 {strides = array<i32>} : memref<4x1x8x8xf32, #tpu.memory_space<vmem>>, vector<1x1x8x8xf32>,
    %cst_28 = arith.constant dense<0.000000e+00> : vector<8x8xf32>
    %43 = tpu.matmul %39, %28, %cst_28 {dimension_numbers = #tpu.dot_dimension_numbers<[1], [0], [0], [1], [0, 0, 1, 1], [], []>} : vector<8x8xf32>, vector<8x8xf32>, vector<8x8xf32> -> vector<8x8xf32>
    %c0_29 = arith.constant 0 : index
    %c8_30 = arith.constant 8 : index
    %44 = vector.load %arg13[%c0_29, %c8_30] : memref<8x32xf32, #tpu.memory_space<vmem>>, vector<8x8xf32>
    tpu.vector_store %arg13[%c0_29, %c8_30], %43 {strides = array<i32>} : memref<8x32xf32, #tpu.memory_space<vmem>>, vector<8x8xf32>,
    %45 = vector.extract_strided_slice %6 {offsets = [0, 16], sizes = [8, 8], strides = [1, 1]} : vector<8x32xf32> to vector<8x8xf32>
    %c0_31 = arith.constant 0 : index
    %c16 = arith.constant 16 : index
    %46 = vector.load %arg11[%c0_31, %c16] : memref<8x32xf32, #tpu.memory_space<vmem>>, vector<8x8xf32>
    %c0_32 = arith.constant 0 : index
    %c16_33 = arith.constant 16 : index
    %47 = vector.load %arg12[%c0_32, %c16_33] : memref<8x32xf32, #tpu.memory_space<vmem>>, vector<8x8xf32>
    %cst_34 = arith.constant dense<0.000000e+00> : vector<8x8xf32>
    %48 = tpu.matmul %45, %46, %cst_34 {dimension_numbers = #tpu.dot_dimension_numbers<[1], [1], [0], [0], [0, 0, 1, 0], [], []>} : vector<8x8xf32>, vector<8x8xf32>, vector<8x8xf32> -> vector<8x8xf32>
    %cst_35 = arith.constant dense<0xFF800000> : vector<8xf32>
    %49 = vector.multi_reduction <maximumf>, %48, %cst_35 [1] : vector<8x8xf32> to vector<8xf32>
    %50 = vector.shape_cast %49 : vector<8xf32> to vector<8x1xf32>
    %51 = vector.broadcast %50 : vector<8x1xf32> to vector<8x8xf32>
    %52 = arith.subf %48, %51 : vector<8x8xf32>
    %53 = math.exp %52 : vector<8x8xf32>
    %cst_36 = arith.constant dense<0.000000e+00> : vector<8xf32>
    %54 = vector.multi_reduction <add>, %53, %cst_36 [1] : vector<8x8xf32> to vector<8xf32>
    %55 = vector.shape_cast %54 : vector<8xf32> to vector<8x1xf32>
    %56 = tpu.reciprocal %55 : vector<8x1xf32> -> vector<8x1xf32>
    %57 = vector.broadcast %56 : vector<8x1xf32> to vector<8x8xf32>
    %58 = arith.mulf %53, %57 : vector<8x8xf32>
    %c2 = arith.constant 2 : index
    %c0_37 = arith.constant 0 : index
    %c0_38 = arith.constant 0 : index
    %c0_39 = arith.constant 0 : index
    %59 = vector.load %arg10[%c2, %c0_37, %c0_38, %c0_39] : memref<4x1x8x8xf32, #tpu.memory_space<vmem>>, vector<1x1x8x8xf32>
    %60 = vector.shape_cast %59 : vector<1x1x8x8xf32> to vector<8x8xf32>
    %61 = vector.shape_cast %58 : vector<8x8xf32> to vector<1x1x8x8xf32>
    tpu.vector_store %arg10[%c2, %c0_37, %c0_38, %c0_39], %61 {strides = array<i32>} : memref<4x1x8x8xf32, #tpu.memory_space<vmem>>, vector<1x1x8x8xf32>,
    %cst_40 = arith.constant dense<0.000000e+00> : vector<8x8xf32>
    %62 = tpu.matmul %58, %47, %cst_40 {dimension_numbers = #tpu.dot_dimension_numbers<[1], [0], [0], [1], [0, 0, 1, 1], [], []>} : vector<8x8xf32>, vector<8x8xf32>, vector<8x8xf32> -> vector<8x8xf32>
    %c0_41 = arith.constant 0 : index
    %c16_42 = arith.constant 16 : index
    %63 = vector.load %arg13[%c0_41, %c16_42] : memref<8x32xf32, #tpu.memory_space<vmem>>, vector<8x8xf32>
    tpu.vector_store %arg13[%c0_41, %c16_42], %62 {strides = array<i32>} : memref<8x32xf32, #tpu.memory_space<vmem>>, vector<8x8xf32>,
    %64 = vector.extract_strided_slice %6 {offsets = [0, 24], sizes = [8, 8], strides = [1, 1]} : vector<8x32xf32> to vector<8x8xf32>
    %c0_43 = arith.constant 0 : index
    %c24 = arith.constant 24 : index
    %65 = vector.load %arg11[%c0_43, %c24] : memref<8x32xf32, #tpu.memory_space<vmem>>, vector<8x8xf32>
    %c0_44 = arith.constant 0 : index
    %c24_45 = arith.constant 24 : index
    %66 = vector.load %arg12[%c0_44, %c24_45] : memref<8x32xf32, #tpu.memory_space<vmem>>, vector<8x8xf32>
    %cst_46 = arith.constant dense<0.000000e+00> : vector<8x8xf32>
    %67 = tpu.matmul %64, %65, %cst_46 {dimension_numbers = #tpu.dot_dimension_numbers<[1], [1], [0], [0], [0, 0, 1, 0], [], []>} : vector<8x8xf32>, vector<8x8xf32>, vector<8x8xf32> -> vector<8x8xf32>
    %cst_47 = arith.constant dense<0xFF800000> : vector<8xf32>
    %68 = vector.multi_reduction <maximumf>, %67, %cst_47 [1] : vector<8x8xf32> to vector<8xf32>
    %69 = vector.shape_cast %68 : vector<8xf32> to vector<8x1xf32>
    %70 = vector.broadcast %69 : vector<8x1xf32> to vector<8x8xf32>
    %71 = arith.subf %67, %70 : vector<8x8xf32>
    %72 = math.exp %71 : vector<8x8xf32>
    %cst_48 = arith.constant dense<0.000000e+00> : vector<8xf32>
    %73 = vector.multi_reduction <add>, %72, %cst_48 [1] : vector<8x8xf32> to vector<8xf32>
    %74 = vector.shape_cast %73 : vector<8xf32> to vector<8x1xf32>
    %75 = tpu.reciprocal %74 : vector<8x1xf32> -> vector<8x1xf32>
    %76 = vector.broadcast %75 : vector<8x1xf32> to vector<8x8xf32>
    %77 = arith.mulf %72, %76 : vector<8x8xf32>
    %c3 = arith.constant 3 : index
    %c0_49 = arith.constant 0 : index
    %c0_50 = arith.constant 0 : index
    %c0_51 = arith.constant 0 : index
    %78 = vector.load %arg10[%c3, %c0_49, %c0_50, %c0_51] : memref<4x1x8x8xf32, #tpu.memory_space<vmem>>, vector<1x1x8x8xf32>
    %79 = vector.shape_cast %78 : vector<1x1x8x8xf32> to vector<8x8xf32>
    %80 = vector.shape_cast %77 : vector<8x8xf32> to vector<1x1x8x8xf32>
    tpu.vector_store %arg10[%c3, %c0_49, %c0_50, %c0_51], %80 {strides = array<i32>} : memref<4x1x8x8xf32, #tpu.memory_space<vmem>>, vector<1x1x8x8xf32>,
    %cst_52 = arith.constant dense<0.000000e+00> : vector<8x8xf32>
    %81 = tpu.matmul %77, %66, %cst_52 {dimension_numbers = #tpu.dot_dimension_numbers<[1], [0], [0], [1], [0, 0, 1, 1], [], []>} : vector<8x8xf32>, vector<8x8xf32>, vector<8x8xf32> -> vector<8x8xf32>
    %c0_53 = arith.constant 0 : index
    %c24_54 = arith.constant 24 : index
    %82 = vector.load %arg13[%c0_53, %c24_54] : memref<8x32xf32, #tpu.memory_space<vmem>>, vector<8x8xf32>
    tpu.vector_store %arg13[%c0_53, %c24_54], %81 {strides = array<i32>} : memref<8x32xf32, #tpu.memory_space<vmem>>, vector<8x8xf32>,
    %c0_55 = arith.constant 0 : index
    %c0_56 = arith.constant 0 : index
    %83 = vector.load %arg13[%c0_55, %c0_56] : memref<8x32xf32, #tpu.memory_space<vmem>>, vector<8x32xf32>
    %c0_57 = arith.constant 0 : index
    %c0_58 = arith.constant 0 : index
    %84 = vector.load %arg8[%c0_57, %c0_58] : memref<32x32xf32, #tpu.memory_space<vmem>>, vector<32x32xf32>
    %cst_59 = arith.constant dense<0.000000e+00> : vector<8x32xf32>
    %85 = tpu.matmul %83, %84, %cst_59 {dimension_numbers = #tpu.dot_dimension_numbers<[1], [0], [0], [1], [0, 0, 1, 1], [], []>} : vector<8x32xf32>, vector<32x32xf32>, vector<8x32xf32> -> vector<8x32xf32>
    %c0_60 = arith.constant 0 : index
    %c0_61 = arith.constant 0 : index
    %c0_62 = arith.constant 0 : index
    %86 = vector.load %arg9[%c0_60, %c0_61, %c0_62] : memref<1x8x32xf32, #tpu.memory_space<vmem>>, vector<1x8x32xf32>
    %87 = vector.shape_cast %86 : vector<1x8x32xf32> to vector<8x32xf32>
    %88 = vector.shape_cast %85 : vector<8x32xf32> to vector<1x8x32xf32>
    tpu.vector_store %arg9[%c0_60, %c0_61, %c0_62], %88 {strides = array<i32>} : memref<1x8x32xf32, #tpu.memory_space<vmem>>, vector<1x8x32xf32>,
    return
  }
  func.func @transform_0(%arg0: i32, %arg1: i32) -> (i32, i32, i32) {
    %c0_i32 = arith.constant 0 : i32
    %c0_i32_0 = arith.constant 0 : i32
    return %arg0, %arg1, %c0_i32 : i32, i32, i32
  }
  func.func @transform_1(%arg0: i32, %arg1: i32) -> (i32, i32, i32) {
    %c0_i32 = arith.constant 0 : i32
    %c0_i32_0 = arith.constant 0 : i32
    %c0_i32_1 = arith.constant 0 : i32
    return %arg0, %c0_i32, %c0_i32_0 : i32, i32, i32
  }
  func.func @transform_2(%arg0: i32, %arg1: i32) -> (i32, i32, i32) {
    %c0_i32 = arith.constant 0 : i32
    %c0_i32_0 = arith.constant 0 : i32
    %c0_i32_1 = arith.constant 0 : i32
    return %arg0, %c0_i32, %c0_i32_0 : i32, i32, i32
  }
  func.func @transform_3(%arg0: i32, %arg1: i32) -> (i32, i32) {
    %c0_i32 = arith.constant 0 : i32
    %c0_i32_0 = arith.constant 0 : i32
    %c0_i32_1 = arith.constant 0 : i32
    return %c0_i32, %c0_i32_0 : i32, i32
  }
  func.func @transform_4(%arg0: i32, %arg1: i32) -> (i32, i32) {
    %c0_i32 = arith.constant 0 : i32
    %c0_i32_0 = arith.constant 0 : i32
    %c0_i32_1 = arith.constant 0 : i32
    return %c0_i32, %c0_i32_0 : i32, i32
  }
  func.func @transform_5(%arg0: i32, %arg1: i32) -> (i32, i32) {
    %c0_i32 = arith.constant 0 : i32
    %c0_i32_0 = arith.constant 0 : i32
    %c0_i32_1 = arith.constant 0 : i32
    return %c0_i32, %c0_i32_0 : i32, i32
  }
  func.func @transform_6(%arg0: i32, %arg1: i32) -> (i32, i32) {
    %c0_i32 = arith.constant 0 : i32
    %c0_i32_0 = arith.constant 0 : i32
    %c0_i32_1 = arith.constant 0 : i32
    return %c0_i32, %c0_i32_0 : i32, i32
  }
  func.func @transform_7(%arg0: i32, %arg1: i32) -> (i32, i32, i32) {
    %c0_i32 = arith.constant 0 : i32
    %c0_i32_0 = arith.constant 0 : i32
    return %arg0, %arg1, %c0_i32 : i32, i32, i32
  }
  func.func @transform_8(%arg0: i32, %arg1: i32) -> (i32, i32, i32, i32) {
    %c0_i32 = arith.constant 0 : i32
    %c0_i32_0 = arith.constant 0 : i32
    %c0_i32_1 = arith.constant 0 : i32
    return %c0_i32, %arg0, %arg1, %c0_i32_0 : i32, i32, i32, i32
  }
}

</mosaic_0001>

<bundles_post_ra>
// kernel: tpu_custom_call.1
= control target key start
LH: loop header
LB: loop body
LE: loop exit
PB: predicated region body
PF: predicated region fallthrough
CT: control target
= control target key end

     0   :  { %s2833_s0 = inlined_call_operand.hbm [shape: f32[2,8,32], index: 0, kind: input, shape index: {}]   ;;  %s2834_s1 = inlined_call_operand.hbm [shape: f32[2,8,32], index: 1, kind: input, shape index: {}]   ;;  %s2835_s2 = inlined_call_operand.hbm [shape: f32[2,8,32], index: 2, kind: input, shape index: {}]   ;;  %s2836_s3 = inlined_call_operand.hbm [shape: f32[32,32], index: 3, kind: input, shape index: {}]   ;;  %s2837_s4 = inlined_call_operand.hbm [shape: f32[32,32], index: 4, kind: input, shape index: {}]   ;;  %s2838_s5 = inlined_call_operand.hbm [shape: f32[32,32], index: 5, kind: input, shape index: {}]   ;;  %s2839_s6 = inlined_call_operand.hbm [shape: f32[32,32], index: 6, kind: input, shape index: {}]   ;;  %s2840_s7 = inlined_call_operand.hbm [shape: f32[2,8,32], index: 7, kind: output, shape index: {0}]   ;;  %s2841_s8 = inlined_call_operand.hbm [shape: f32[4,2,8,8], index: 8, kind: output, shape index: {1}]  }
   0x1   :  { %2857 = sst [smem:[#allocation32_spill]] %s2834_s1 }
   0x2   :  { %2858 = sst [smem:[#allocation33_spill]] %s2836_s3 }
   0x3   :  { %2859 = sst [smem:[#allocation34_spill]] %s2837_s4 }
   0x4   :  { %2860 = sst [smem:[#allocation35_spill]] %s2838_s5 }
   0x5   :  { %14 = vsyncpa [#allocation6], 0 }
   0x6   :  { %16 = vsyncpa [#allocation6 + $0x1], 0 }
   0x7   :  { %17 = vsyncpa [#allocation9], 0 }
   0x8   :  { %19 = vsyncpa [#allocation9 + $0x1], 0 }
   0x9   :  { %20 = vsyncpa [#allocation12], 0 }
   0xa   :  { %21 = vsyncpa [#allocation15], 0 }
   0xb   :  { %22 = vsyncpa [#allocation7], 0 }
   0xc   :  { %24 = vsyncpa [#allocation7 + $0x1], 0 }
   0xd   :  { %25 = vsyncpa [#allocation19], 0 }
   0xe   :  { %27 = vsyncpa [#allocation19 + $0x1], 0  ;;  %s2420_s27 = smov 0   ;;  %s2422_s28 = smov 0  }
   0xf   :  { %s2424_s29 = smov 0   ;;  %s2426_s30 = smov 0  }
  0x10   :  { %s2428_s9 = smov 0   ;;  %s2430_s10 = smov 0  }
  0x11 LB: > { %2861 = sst [smem:[#allocation26_spill]] %s2332_s27  ;;  %s2451_s11 = sadd.s32 4294967295, %s2352_s10   ;;  %s2352_s10 = sphi %s2430_s10, %s33_s10   ;;  %s2348_s9 = sphi %s2428_s9, %s2897_s9   ;;  %s2344_s30 = sphi %s2426_s30, %s2896_s30   ;;  %s2340_s29 = sphi %s2424_s29, %s2900_s29   ;;  %s2336_s28 = sphi %s2422_s28, %s2899_s28   ;;  %s2332_s27 = sphi %s2420_s27, %s2898_s27  }
  0x12   : > { %2862 = sst [smem:[#allocation27_spill]] %s2348_s9  ;;  %p1729_p0 = scmp.ge.s32.totalorder %s2352_s10, 1 }
  0x13   : > { %2863 = sst [smem:[#allocation28_spill]] %s2352_s10  ;;  %p2851_p1 = scmp.eq.s32.totalorder %s2451_s11, 0 }
  0x14   : > { %p270_p2 = scmp.lt.s32.totalorder %s2352_s10, 3  ;;  %s2354_s13 = smov [#allocation11]  }
  0x15   : > { %s282_s14 = sshll.u32 %s2354_s13, 4  ;;  %s2355_s16 = smov [#allocation14]   ;;  %s283_s14 = int_to_ptr.vmem [resolvable:$true] %s282_s14 }
  0x16   : > { %p2456_p3 = pnand %p1729_p0, %p270_p2  ;;  %s308_s17 = sshll.u32 %s2355_s16, 4  ;;  %s309_s17 = int_to_ptr.vmem [resolvable:$true] %s308_s17 }
  0x17   : > { %s2053_s18 = scalar_lea.vmem %s283_s14, 512  ;;  %p2061_p11 = scmp.lt.s32.totalorder %s283_s14, %s283_s14 }
  0x18   : > { %p1922_p4 = pneg %p2456_p3  ;;  %p2054_p8 = scmp.ne.s32.totalorder %s283_s14, %s2053_s18 }
  0x19   : > { %p2062_p12 = scmp.lt.s32.totalorder %s2053_s18, %s2053_s18 }
  0x1a   : > { %p2465_p6 = pnand %p1922_p4, %p2851_p1 }
  0x1b   : > { %p2063_p13 = por %p2062_p12, %p2061_p11 }
  0x1c   : > { %p2852_p7 = pneg %p2465_p6 }
  0x1e   : > { %p2056_p9 = pnand %p2054_p8, %p2852_p7 }
  0x20   : > { %p2057_p10 = pneg %p2056_p9 }
  0x22   : > { %p2064_p0 = pnand %p2063_p13, %p2057_p10 }
  0x24   : > { %2067 = shalt.err (!%p2064_p0)
}
  0x25   : > { %s2842_s19 = smov 128   ;;  %s2844_s20 = smov 8  }
  0x26   : > { %s2866_s3 = sld [smem:[#allocation33_spill]]  ;;  %s2079_s23 = scalar_lea.vmem %s309_s17, 512 }
  0x27   : > { %p2080_p2 = scmp.ne.s32.totalorder %s309_s17, %s2079_s23  ;;  %p2087_p9 = scmp.lt.s32.totalorder %s309_s17, %s309_s17 }
  0x28   : > { %p2088_p10 = scmp.lt.s32.totalorder %s2079_s23, %s2079_s23 }
  0x29   : > { %p2082_p4 = pnand %p2080_p2, %p2852_p7 }
  0x2a   : > { %p2089_p11 = por %p2088_p10, %p2087_p9 }
  0x2b   : > { %p2083_p8 = pneg %p2082_p4 }
  0x2c   : > { %1925 = dma.hbm_to_vmem [thread:$0]  (!%p2465_p6), %s2866_s3, 512, %s283_s14, [#allocation12], %s2842_s19, %s2842_s19, %s2844_s20  }
  0x2d   : > { %p2090_p12 = pnand %p2089_p11, %p2083_p8 }
  0x2f   : > { %2093 = shalt.err (!%p2090_p12)
}
  0x30   : > { %s2867_s5 = sld [smem:[#allocation35_spill]]  ;;  %s1728_s26 = sadd.s32 4294967294, %s2352_s10  }
  0x31   : > { %s45_s13 = sadd.s32 1, %s2348_s9  ;;  %s54_s14 = sadd.s32 1, %s2340_s29 }
  0x32   : > { %p47_p13 = scmp.ge.s32.totalorder %s45_s13, 2  ;;  %p61_p0 = scmp.ne.s32.totalorder %s2340_s29, %s2336_s28 }
  0x33   : > { %p62_p2 = scmp.eq.s32.totalorder %s2352_s10, 0  ;;  %p67_p8 = scmp.ne.s32.totalorder %s2336_s28, %s2332_s27 }
  0x34   : > { %s2902_s13 = smov (%p47_p13, %s45_s13), 0  ;;  %p229_p9 = scmp.eq.s32.totalorder %s2451_s11, 1 }
  0x35   : > { %2868 = sst [smem:[#allocation29_spill]] %s2902_s13  ;;  %p2501_p4 = por %p62_p2, %p61_p0 }
  0x36   : > { %1931 = dma.hbm_to_vmem [thread:$0]  (!%p2465_p6), %s2867_s5, 512, %s309_s17, [#allocation15], %s2842_s19, %s2842_s19, %s2844_s20  }
  0x37   : > { %s49_s17 = ssub.s32 %s2348_s9, %s2902_s13  ;;  %p2512_p11 = por %p2851_p1, %p67_p8 }
  0x38   : > { %p52_p10 = scmp.eq.s32.totalorder %s49_s17, 0  ;;  %p2516_p12 = por %p229_p9, %p61_p0 }
  0x39   : > { %p235_p13 = scmp.eq.s32.totalorder %s1728_s26, 1  ;;  %p1956_p5 = scmp.lt.s32.totalorder %s2352_s10, 2 }
  0x3a   : > { %s2871_s21 = scalar_select %p2516_p12, 1, 0 }
  0x3b   : > { %s2521_s22 = scalar_select %p52_p10, %s2340_s29, %s54_s14  }
  0x3c   : > { %p2523_p2 = por %p235_p13, %p67_p8  ;;  %s2848_s24 = sand.u32 1, %s2340_s29  }
  0x3d   : > { %2872 = sst [smem:[#allocation30_spill]] %s2521_s22  ;;  %s2530_s25 = sshll.u32 %s2348_s9, 7 }
  0x3e   : > { %s2873_s23 = scalar_select %p2523_p2, 1, 0 }
  0x3f   : > { %s2534_s17 = sshll.u32 %s2848_s24, 3  ;;  %p2538_p0 = pnand %p1956_p5, %p2501_p4 }
  0x40   : > { %2874 = sst [smem:[#allocation31_spill]] %s2873_s23  ;;  %s354_s26 = sand.u32 1, %s2352_s10  }
  0x41   : > { %s2876_s1 = sld [smem:[#allocation32_spill]]  ;;  %s358_s5 = scalar_lea.vmem [#allocation8], %s2534_s17 }
  0x42   : > { %s365_s13 = sshll.u32 %s358_s5, 4  ;;  %s2548_s9 = scalar_lea.sflag [#allocation9], %s354_s26  ;;  %s366_s13 = int_to_ptr.vmem [resolvable:$true] %s365_s13 }
  0x43   : > { %p2853_p8 = pneg %p2538_p0  ;;  %s2107_s16 = scalar_lea.vmem %s366_s13, 128 }
  0x44   : > { %p2108_p9 = scmp.ne.s32.totalorder %s366_s13, %s2107_s16  ;;  %s2358_s24 = smov [#allocation8]  }
  0x45   : > { %s2112_s22 = sshll.u32 %s2358_s24, 4  ;;  %s2113_s22 = int_to_ptr.vmem [resolvable:$false] %s2112_s22 }
  0x46   : > { %p2110_p5 = pnand %p2108_p9, %p2853_p8  ;;  %s2114_s10 = scalar_lea.vmem %s2113_s22, 256 }
  0x47   : > { %s363_s3 = scalar_lea.hbm %s2876_s1, %s2530_s25  ;;  %p2115_p10 = scmp.lt.s32.totalorder %s366_s13, %s2113_s22 }
  0x48   : > { %p2111_p4 = pneg %p2110_p5  ;;  %p2116_p13 = scmp.lt.s32.totalorder %s2114_s10, %s2107_s16 }
  0x4a   : > { %p2117_p1 = por %p2116_p13, %p2115_p10 }
  0x4c   : > { %p2118_p7 = pnand %p2117_p1, %p2111_p4 }
  0x4e   : > { %2121 = shalt.err (!%p2118_p7)
}
  0x4f   : > { %1941 = dma.hbm_to_vmem [thread:$0]  (!%p2538_p0), %s363_s3, 128, %s366_s13, %s2548_s9  }
  0x50   : > { %s2359_s5 = smov [#allocation13]   ;;  %s2360_s26 = smov [#allocation16]  }
  0x51   : > { %s295_s20 = sshll.u32 %s2359_s5, 4  ;;  %s321_s14 = sshll.u32 %s2360_s26, 4  ;;  %s296_s20 = int_to_ptr.vmem [resolvable:$true] %s295_s20  ;;  %s322_s14 = int_to_ptr.vmem [resolvable:$true] %s321_s14 }
  0x52   : > { %s2133_s1 = scalar_lea.vmem %s296_s20, 512  ;;  %p2877_p5 = pneg %p2465_p6 }
  0x53   : > { %p2134_p9 = scmp.ne.s32.totalorder %s296_s20, %s2133_s1  ;;  %p2141_p12 = scmp.lt.s32.totalorder %s296_s20, %s296_s20 }
  0x54   : > { %p2142_p10 = scmp.lt.s32.totalorder %s2133_s1, %s2133_s1 }
  0x55   : > { %p2136_p8 = pnand %p2134_p9, %p2877_p5 }
  0x56   : > { %p2143_p1 = por %p2142_p10, %p2141_p12 }
  0x57   : > { %p2137_p2 = pneg %p2136_p8 }
  0x59   : > { %p2144_p7 = pnand %p2143_p1, %p2137_p2 }
  0x5b   : > { %2147 = shalt.err (!%p2144_p7)
}
  0x5c   : > { %s2878_s10 = smov 8   ;;  %s2879_s3 = smov 128  }
  0x5d   : > { %s2880_s4 = sld [smem:[#allocation34_spill]]  ;;  %s2159_s24 = scalar_lea.vmem %s322_s14, 512 }
  0x5e   : > { %p2160_p4 = scmp.ne.s32.totalorder %s322_s14, %s2159_s24  ;;  %p2881_p8 = pmov %p2877_p5 }
  0x5f   : > { %p2167_p12 = scmp.lt.s32.totalorder %s322_s14, %s322_s14  ;;  %p2168_p2 = scmp.lt.s32.totalorder %s2159_s24, %s2159_s24 }
  0x60   : > { %p2162_p13 = pnand %p2160_p4, %p2881_p8 }
  0x61   : > { %p2169_p5 = por %p2168_p2, %p2167_p12 }
  0x62   : > { %p2163_p9 = pneg %p2162_p13 }
  0x63   : > { %1928 = dma.hbm_to_vmem [thread:$0]  (!%p2465_p6), %s2880_s4, 512, %s296_s20, [#allocation12], %s2879_s3, %s2879_s3, %s2878_s10  }
  0x64   : > { %p2170_p10 = pnand %p2169_p5, %p2163_p9 }
  0x66   : > { %2173 = shalt.err (!%p2170_p10)
}
  0x67   : > { %1934 = dma.hbm_to_vmem [thread:$0]  (!%p2465_p6), %s2839_s6, 512, %s322_s14, [#allocation15], %s2879_s3, %s2879_s3, %s2878_s10  }
  0x68   : > { %s345_s26 = scalar_lea.hbm %s2833_s0, %s2530_s25  ;;  %s339_s13 = scalar_lea.vmem [#allocation5], %s2534_s17 }
  0x69   : > { %s347_s22 = sshll.u32 %s339_s13, 4  ;;  %s381_s4 = scalar_lea.hbm %s2835_s2, %s2530_s25  ;;  %s348_s22 = int_to_ptr.vmem [resolvable:$true] %s347_s22 }
  0x6a   : > { %s2882_s23 = sand.u32 1, %s2340_s29   ;;  %s2187_s1 = scalar_lea.vmem %s348_s22, 128 }
  0x6b   : > { %s336_s27 = scalar_lea.sflag [#allocation6], %s2882_s23  ;;  %p2188_p1 = scmp.ne.s32.totalorder %s348_s22, %s2187_s1 }
  0x6c   : > { %p2883_p7 = pneg %p2538_p0  ;;  %s2361_s14 = smov [#allocation5]  }
  0x6d   : > { %s2192_s10 = sshll.u32 %s2361_s14, 4  ;;  %s2193_s10 = int_to_ptr.vmem [resolvable:$false] %s2192_s10 }
  0x6e   : > { %p2190_p4 = pnand %p2188_p1, %p2883_p7  ;;  %s2194_s3 = scalar_lea.vmem %s2193_s10, 256 }
  0x6f   : > { %p2195_p6 = scmp.lt.s32.totalorder %s348_s22, %s2193_s10  ;;  %p2196_p13 = scmp.lt.s32.totalorder %s2194_s3, %s2187_s1 }
  0x70   : > { %p2191_p8 = pneg %p2190_p4 }
  0x71   : > { %p2197_p9 = por %p2196_p13, %p2195_p6 }
  0x73   : > { %p2198_p12 = pnand %p2197_p9, %p2191_p8 }
  0x75   : > { %2201 = shalt.err (!%p2198_p12)
}
  0x76   : > { %1938 = dma.hbm_to_vmem [thread:$0]  (!%p2538_p0), %s345_s26, 128, %s348_s22, %s336_s27  }
  0x77   : > { %s376_s23 = scalar_lea.vmem [#allocation10], %s2534_s17  ;;  %p2884_p5 = pmov %p2883_p7 }
  0x78   : > { %s383_s16 = sshll.u32 %s376_s23, 4  ;;  %s2362_s20 = smov [#allocation10]   ;;  %s384_s16 = int_to_ptr.vmem [resolvable:$true] %s383_s16 }
  0x79   : > { %s2215_s5 = scalar_lea.vmem %s384_s16, 128  ;;  %s2220_s13 = sshll.u32 %s2362_s20, 4  ;;  %s2221_s13 = int_to_ptr.vmem [resolvable:$false] %s2220_s13 }
  0x7a   : > { %p2216_p2 = scmp.ne.s32.totalorder %s384_s16, %s2215_s5  ;;  %s2222_s15 = scalar_lea.vmem %s2221_s13, 256 }
  0x7b   : > { %p2223_p7 = scmp.lt.s32.totalorder %s384_s16, %s2221_s13  ;;  %p2224_p4 = scmp.lt.s32.totalorder %s2222_s15, %s2215_s5 }
  0x7c   : > { %p2218_p10 = pnand %p2216_p2, %p2884_p5 }
  0x7d   : > { %p2225_p8 = por %p2224_p4, %p2223_p7 }
  0x7e   : > { %p2219_p1 = pneg %p2218_p10 }
  0x80   : > { %p2226_p6 = pnand %p2225_p8, %p2219_p1 }
  0x82   : > { %2229 = shalt.err (!%p2226_p6)
}
  0x83   : > { %1944 = dma.hbm_to_vmem [thread:$0]  (!%p2538_p0), %s381_s4, 128, %s384_s16, %s2548_s9  }
  0x84   : > { %392 = sbr.rel (%p2456_p3) target bundleno = 1964 (0x7ac), region = 48  ;;  %s2611_s26 = sand.u32 (!%p2456_p3), 1, %s2336_s28  }
  0x85   : > { %s2614_s22 = sshll.u32 (!%p2456_p3), %s2611_s26, 3  ;;  %s395_s19 = scalar_lea.sflag (!%p2456_p3), [#allocation6], %s2611_s26 }
  0x86   : > { %s398_s24 = scalar_lea.vmem (!%p2456_p3), [#allocation5], %s2614_s22 }
  0x89   : > { %2307 = dma.done.wait (%p2512_p11), %s395_s19, 128  }
  0x8a   : > { %2309 = vsyncadd (%p2512_p11), %s395_s19, 4294967168  ;;  %s403_s4 = sand.u32 1, %s2451_s11   ;;  %s407_s12 = scalar_lea.vmem [#allocation8], %s2614_s22 }
  0x8b   : > { %s404_s9 = scalar_lea.sflag [#allocation9], %s403_s4 }
  0x8c   : > { %2311 = dma.done.wait (%p2512_p11), %s404_s9, 256  }
  0x8d   : > { %2313 = vsyncadd (%p2512_p11), %s404_s9, 4294967040  ;;  %s416_s25 = scalar_lea.vmem [#allocation10], %s2614_s22  ;;  %p2885_p3 = scmp.eq.s32.totalorder %s2451_s11, 0 }
  0x8f   : > { %2315 = dma.done.wait (%p2885_p3), [#allocation12], 1024   ;;  %p2886_p0 = pmov %p2885_p3 }
  0x91   : > { %2317 = vsyncadd (%p2886_p0), [#allocation12], 4294966272  ;;  %p2887_p13 = pmov %p2886_p0 }
  0x92   : > { %p2888_p9 = pmov %p2886_p0 }
  0x93   : > { %2319 = dma.done.wait (%p2887_p13), [#allocation15], 1024  }
  0x94   : > { %2321 = vsyncadd (%p2888_p9), [#allocation15], 4294966272  ;;  %v2363_v0 = vmov 0.0   ;;  %vm2364_vm0 = vmmov 0   ;;  %v488_v1 = vld [vmem:[#allocation13 + $0x18] sm:$0xff]  ;;  %v487_v2 = vld [vmem:[#allocation13 + $0x10] sm:$0xff] }
  0x95   : > { %1812 = vmatprep.subr.mxu0 %v2363_v0  ;;  %1820 = vmatprep.mubr.msk.f32.mxu0 %vm2364_vm0, %v2363_v0  ;;  %v486_v3 = vld [vmem:[#allocation13 + $0x8] sm:$0xff]  ;;  %v485_v4 = vld [vmem:[#allocation13] sm:$0xff]  ;;  %vm489_vm1 = vcmask 261120   ;;  %v647_v6 = vld [vmem:[#allocation11 + $0x18] sm:$0xff]  ;;  %vm724_vm2 = vcmask 64512   ;;  %s2365_s11 = smov 120  }
  0x96   : > { %1823 = vmatprep.subr.mxu1 %v2363_v0  ;;  %1831 = vmatprep.mubr.msk.f32.mxu1 %vm2364_vm0, %v2363_v0  ;;  %v484_v5 = vld [vmem:[%s407_s12] sm:$0xff]  ;;  %v646_v7 = vld [vmem:[#allocation11 + $0x10] sm:$0xff]  ;;  %v568_v11 = vld [vmem:[#allocation14 + $0x18] sm:$0xff]  ;;  %s2366_s18 = smov 112   ;;  %s2367_s1 = smov 104   ;;  %vm1062_vm3 = vcmask 130112  }
  0x97   : > { %1813 = vmatpush3.msra.mxu0 %v488_v1  ;;  %v645_v8 = vld [vmem:[#allocation11 + $0x8] sm:$0xff]  ;;  %v644_v9 = vld [vmem:[#allocation11] sm:$0xff]  ;;  %v643_v10 = vld [vmem:[%s398_s24] sm:$0xff]  ;;  %1824 = vmatpush3.msra.mxu1 %v568_v11  ;;  %s1750_s14 = sshll.u32 %s2611_s26, 5  ;;  %s2368_s3 = smov 8   ;;  %vm1239_vm4 = vcmask 195712  }
  0x98   : > { %1814 = vmatprep.subr.mxu0 %v2363_v0  ;;  %1825 = vmatprep.subr.mxu1 %v2363_v0  ;;  %v567_v12 = vld [vmem:[#allocation14 + $0x10] sm:$0xff]  ;;  %v566_v13 = vld [vmem:[#allocation14 + $0x8] sm:$0xff]  ;;  %v565_v14 = vld [vmem:[#allocation14] sm:$0xff]  ;;  %s2698_s10 = scalar_lea.vmem [#allocation18], %s1750_s14  ;;  %s2369_s23 = smov 16   ;;  %vm1416_vm5 = vcmask 261312  }
  0x99   : > { %1815 = vmatpush3.msra.mxu0 %v487_v2  ;;  %1826 = vmatpush3.msra.mxu1 %v567_v12  ;;  %v564_v15 = vld [vmem:[%s416_s25] sm:$0xff]  ;;  %s2370_s16 = smov 24   ;;  %s1772_s5 = sshll.u32 %s2344_s30, 7 }
  0x9a   : > { %1816 = vmatprep.subr.mxu0 %v2363_v0  ;;  %1827 = vmatprep.subr.mxu1 %v2363_v0  ;;  %s2749_s15 = scalar_lea.hbm %s2841_s8, %s1772_s5  ;;  %s1530_s27 = sshll.u32 %s2698_s10, 4  ;;  %s2752_s27 = int_to_ptr.vmem [resolvable:$true] %s1530_s27 }
  0x9b   : > { %1817 = vmatpush3.msra.mxu0 %v486_v3  ;;  %1828 = vmatpush3.msra.mxu1 %v566_v13  ;;  %s1503_s17 = scalar_lea.sflag [#allocation19], %s2611_s26  ;;  %s2230_s19 = scalar_lea.vmem %s2752_s27, 512 }
  0x9c   : > { %1818 = vmatprep.subr.mxu0 %v2363_v0  ;;  %1829 = vmatprep.subr.mxu1 %v2363_v0  ;;  %p2231_p11 = scmp.ne.s32.totalorder %s2752_s27, %s2230_s19  ;;  %p2889_p12 = scmp.ne.s32.totalorder %s2871_s21, 0 }
  0x9d   : > { %1819 = vmatpush3.msra.mxu0 %v485_v4  ;;  %1830 = vmatpush3.msra.mxu1 %v565_v14  ;;  %s2371_s24 = smov [#allocation18]  }
  0x9e   : > { %1821 = vmatmul.mubr.msk.f32.vlgmr.msra.gmra.mxu0 %vm489_vm1, %v484_v5  ;;  %1834 = vmatprep.subr.mxu0 %v2363_v0  ;;  %p2232_p2 = pnand %p2231_p11, %p2889_p12  ;;  %s2234_s4 = sshll.u32 %s2371_s24, 4  ;;  %s2235_s4 = int_to_ptr.vmem [resolvable:$false] %s2234_s4 }
  0x9f   : > { %1835 = vmatpush3.msra.mxu0 %v647_v6  ;;  %1842 = vmatprep.mubr.msk.f32.mxu0 %vm2364_vm0, %v2363_v0  ;;  %s2236_s9 = scalar_lea.vmem %s2235_s4, 1024  ;;  %p2237_p10 = scmp.lt.s32.totalorder %s2752_s27, %s2235_s4 }
  0xa0   : > { %1836 = vmatprep.subr.mxu0 %v2363_v0  ;;  %1832 = vmatmul.mubr.msk.f32.vlgmr.msra.gmra.mxu1 %vm489_vm1, %v564_v15  ;;  %p2233_p5 = pneg %p2232_p2  ;;  %p2238_p1 = scmp.lt.s32.totalorder %s2236_s9, %s2230_s19 }
  0xa1   : > { %1837 = vmatpush3.msra.mxu0 %v646_v7  ;;  %1845 = vmatprep.subr.mxu1 %v2363_v0 }
  0xa2   : > { %1838 = vmatprep.subr.mxu0 %v2363_v0  ;;  %1847 = vmatprep.mubr.msk.f32.mxu1 %vm2364_vm0, %v2363_v0  ;;  %p2239_p7 = por %p2238_p1, %p2237_p10 }
  0xa3   : > { %1839 = vmatpush3.msra.mxu0 %v645_v8 }
  0xa4   : > { %1840 = vmatprep.subr.mxu0 %v2363_v0  ;;  %p2240_p4 = pnand %p2239_p7, %p2233_p5 }
  0xa5   : > { %1841 = vmatpush3.msra.mxu0 %v644_v9 }
  0xa6   : > { %1843 = vmatmul.mubr.msk.f32.vlgmr.msra.gmra.mxu0 %vm489_vm1, %v643_v10  ;;  %1865 = vmatprep.subr.mxu0 %v2363_v0 }
  0xa7   : > { %1867 = vmatprep.mubr.msk.f32.mxu0 %vm2364_vm0, %v2363_v0 }
 0x15e   : > { %v559_v16 = vpop.f32.mrf.mxu0 }
 0x15f   : > { %563 = vst.msk [vmem:[#allocation2] sm:$0xff] %vm489_vm1, %v559_v16  ;;  %v1422_v16 = vld [vmem:[#allocation16 + $0x18] sm:$0xff] }
 0x160   : > { %v1822_v17 = vpop.f32.mrf.mxu0  ;;  %v638_v21 = vpop.f32.mrf.mxu1 }
 0x161   : > { %642 = vst.msk [vmem:[#allocation3] sm:$0xff] %vm489_vm1, %v638_v21  ;;  %v1421_v17 = vld [vmem:[#allocation16 + $0x10] sm:$0xff] }
 0x162   : > { %v1833_v22 = vpop.f32.mrf.mxu1 }
 0x166   : > { %v887_v18 = vld [vmem:[#allocation2] sm:$0xff]  ;;  %v718_v19 = vpop.f32.mrf.mxu0 }
 0x167   : > { %892 = vrot.lane.b32.xlu1 %v887_v18, %s2365_s11  ;;  %1846 = vmatpush3.xpose.msk.msra.mxu1 %vm724_vm2, %v887_v18 }
 0x168   : > { %v1844_v20 = vpop.f32.mrf.mxu0  ;;  %1850 = vmatprep.subr.mxu1 %v2363_v0  ;;  %v2680_v23 = vld [vmem:[#allocation3] sm:$0xff] }
 0x169   : > { %v1419_v20 = vld [vmem:[#allocation16] sm:$0xff] }
 0x16a   : > { %1848 = vmatmul.mubr.msk.f32.vlgmr.msra.gmra.mxu1 %vm724_vm2, %v718_v19 }
 0x16b   : > { %889 = vrot.lane.b32.xlu1 %v718_v19, %s2365_s11  ;;  %1852 = vmatprep.mubr.msk.f32.mxu1 %vm2364_vm0, %v2363_v0 }
 0x16c   : > { %1851 = vmatpush3.msra.mxu1 %v2680_v23 }
 0x16d   : > { %1855 = vmatprep.subr.mxu1 %v2363_v0 }
 0x16f   : > { %1066 = vrot.lane.b32.xlu1 %v718_v19, %s2366_s18 }
 0x173   : > { %1246 = vrot.lane.b32.xlu1 %v887_v18, %s2367_s1 }
 0x177   : > { %1243 = vrot.lane.b32.xlu1 %v718_v19, %s2367_s1 }
 0x1d9   : > { %v893_v32 = vpop.permute.xlu1 %892 }
 0x1dd   : > { %v890_v33 = vpop.permute.xlu1 %889 }
 0x1e1   : > { %v1067_v34 = vpop.permute.xlu1 %1066 }
 0x1e5   : > { %v1247_v37 = vpop.permute.xlu1 %1246 }
 0x1e9   : > { %v1244_v38 = vpop.permute.xlu1 %1243 }
 0x22a   : > { %v797_v24 = vpop.f32.mrf.mxu1 }
 0x22b   : > { %v801_v25 = vsel %vm724_vm2, %v797_v24, -inf }
 0x22c   : > { %802 = vmax.xlane.f32.xlu0 %v801_v25  ;;  %v1849_v26 = vpop.f32.mrf.mxu1 }
 0x2b5   : > { %v803_v27 = vpop.xlane.xlu0 %802 }
 0x2b6   : > { %v804_v28 = vsub.f32 %v797_v24, %v803_v27 }
 0x2b8   : > { %v805_v29 = vmul.f32 1.442695, %v804_v28 }
 0x2ba   : > { %2026 = vpow2.f32 %v805_v29 }
 0x2c7   : > { %v2027_v30 = vpop.eup %2026 }
 0x2c8   : > { %v807_v31 = vsel %vm724_vm2, %v2027_v30, 0.0 }
 0x2c9   : > { %808 = vadd.xlane.f32.xlu0 %v807_v31 }
 0x2df   : > { %1069 = vrot.lane.b32.xlu0 %v887_v18, %s2366_s18  ;;  %v1420_v18 = vld [vmem:[#allocation16 + $0x8] sm:$0xff] }
 0x352   : > { %v809_v35 = vpop.xlane.xlu0 %808 }
 0x353   : > { %2028 = vrcp.f32 %v809_v35 }
 0x356   : > { %v1070_v36 = vpop.permute.xlu0 %1069 }
 0x357   : > { %1866 = vmatpush3.xpose.msk.msra.mxu0 %vm724_vm2, %v1070_v36 }
 0x358   : > { %1875 = vmatprep.subr.mxu0 %v2363_v0 }
 0x35a   : > { %1868 = vmatmul.mubr.msk.f32.vlgmr.msra.gmra.mxu0 %vm724_vm2, %v1067_v34 }
 0x35b   : > { %1876 = vmatpush3.xpose.msk.msra.mxu0 %vm724_vm2, %v1247_v37  ;;  %1877 = vmatprep.mubr.msk.f32.mxu0 %vm2364_vm0, %v2363_v0 }
 0x35c   : > { %1885 = vmatprep.subr.mxu0 %v2363_v0 }
 0x35e   : > { %1878 = vmatmul.mubr.msk.f32.vlgmr.msra.gmra.mxu0 %vm724_vm2, %v1244_v38 }
 0x35f   : > { %1893 = vmatprep.mubr.msk.f32.mxu0 %vm2364_vm0, %v2363_v0  ;;  %1886 = vmatpush3.msra.mxu0 %v1422_v16 }
 0x360   : > { %v2029_v39 = vpop.eup %2028  ;;  %1887 = vmatprep.subr.mxu0 %v2363_v0 }
 0x361   : > { %v811_v40 = vmul.f32 %v2029_v39, %v2027_v30  ;;  %1888 = vmatpush3.msra.mxu0 %v1421_v17 }
 0x362   : > { %1889 = vmatprep.subr.mxu0 %v2363_v0 }
 0x363   : > { %812 = vst.msk [vmem:[%s2698_s10] sm:$0xff] %vm724_vm2, %v811_v40  ;;  %1853 = vmatmul.mubr.msk.f32.vlgmr.msra.gmra.mxu1 %vm724_vm2, %v811_v40  ;;  %1890 = vmatpush3.msra.mxu0 %v1420_v18 }
 0x364   : > { %1856 = vmatpush3.xpose.msk.msra.mxu1 %vm724_vm2, %v893_v32  ;;  %1857 = vmatprep.mubr.msk.f32.mxu1 %vm2364_vm0, %v2363_v0 }
 0x365   : > { %1860 = vmatprep.subr.mxu1 %v2363_v0  ;;  %1891 = vmatprep.subr.mxu0 %v2363_v0 }
 0x366   : > { %1892 = vmatpush3.msra.mxu0 %v1419_v20 }
 0x367   : > { %1858 = vmatmul.mubr.msk.f32.vlgmr.msra.gmra.mxu1 %vm724_vm2, %v890_v33 }
 0x368   : > { %1862 = vmatprep.mubr.msk.f32.mxu1 %vm2364_vm0, %v2363_v0 }
 0x41a   : > { %v1141_v41 = vpop.f32.mrf.mxu0 }
 0x41b   : > { %v1145_v42 = vsel %vm724_vm2, %v1141_v41, -inf }
 0x41c   : > { %1146 = vmax.xlane.f32.xlu0 %v1145_v42  ;;  %v1869_v43 = vpop.f32.mrf.mxu0 }
 0x41e   : > { %v1318_v44 = vpop.f32.mrf.mxu0 }
 0x41f   : > { %v1322_v51 = vsel %vm724_vm2, %v1318_v44, -inf }
 0x420   : > { %v1879_v45 = vpop.f32.mrf.mxu0 }
 0x423   : > { %v882_v46 = vpop.f32.mrf.mxu1 }
 0x424   : > { %886 = vst.msk [vmem:[#allocation4] sm:$0xff] %vm724_vm2, %v882_v46 }
 0x425   : > { %v1854_v47 = vpop.f32.mrf.mxu1 }
 0x427   : > { %v964_v48 = vpop.f32.mrf.mxu1 }
 0x428   : > { %v968_v49 = vsel %vm724_vm2, %v964_v48, -inf }
 0x429   : > { %969 = vmax.xlane.f32.xlu1 %v968_v49  ;;  %v1859_v50 = vpop.f32.mrf.mxu1 }
 0x42d   : > { %1323 = vmax.xlane.f32.xlu1 %v1322_v51 }
 0x4a5   : > { %v1147_v52 = vpop.xlane.xlu0 %1146 }
 0x4a6   : > { %v1148_v53 = vsub.f32 %v1141_v41, %v1147_v52 }
 0x4a8   : > { %v1149_v54 = vmul.f32 1.442695, %v1148_v53 }
 0x4aa   : > { %2030 = vpow2.f32 %v1149_v54 }
 0x4b2   : > { %v970_v55 = vpop.xlane.xlu1 %969 }
 0x4b3   : > { %v971_v63 = vsub.f32 %v964_v48, %v970_v55 }
 0x4b5   : > { %v972_v1 = vmul.f32 1.442695, %v971_v63 }
 0x4b6   : > { %v1324_v56 = vpop.xlane.xlu1 %1323 }
 0x4b7   : > { %v2031_v57 = vpop.eup %2030  ;;  %v1325_v58 = vsub.f32 %v1318_v44, %v1324_v56 }
 0x4b8   : > { %v1151_v59 = vsel %vm724_vm2, %v2031_v57, 0.0 }
 0x4b9   : > { %v1326_v60 = vmul.f32 1.442695, %v1325_v58  ;;  %1152 = vadd.xlane.f32.xlu0 %v1151_v59 }
 0x4bb   : > { %2032 = vpow2.f32 %v1326_v60 }
 0x4bc   : > { %2034 = vpow2.f32 %v972_v1 }
 0x4c8   : > { %v2033_v61 = vpop.eup %2032 }
 0x4c9   : > { %v1328_v62 = vsel %vm724_vm2, %v2033_v61, 0.0  ;;  %v2035_v2 = vpop.eup %2034 }
 0x4ca   : > { %1329 = vadd.xlane.f32.xlu1 %v1328_v62  ;;  %v974_v3 = vsel %vm724_vm2, %v2035_v2, 0.0 }
 0x4cf   : > { %982 = vrot.lane.b32.xlu0 %v2680_v23, %s2365_s11 }
 0x4db   : > { %1159 = vrot.lane.b32.xlu1 %v2680_v23, %s2366_s18 }
 0x4ff   : > { %975 = vadd.xlane.f32.xlu1 %v974_v3 }
 0x510   : > { %1336 = vrot.lane.b32.xlu1 %v2680_v23, %s2367_s1 }
 0x542   : > { %v1153_v4 = vpop.xlane.xlu0 %1152 }
 0x543   : > { %2036 = vrcp.f32 %v1153_v4 }
 0x546   : > { %v983_v5 = vpop.permute.xlu0 %982 }
 0x547   : > { %1861 = vmatpush3.msra.mxu1 %v983_v5 }
 0x548   : > { %1870 = vmatprep.subr.mxu1 %v2363_v0 }
 0x550   : > { %v2037_v6 = vpop.eup %2036 }
 0x551   : > { %v1155_v7 = vmul.f32 %v2037_v6, %v2031_v57 }
 0x553   : > { %v1330_v8 = vpop.xlane.xlu1 %1329  ;;  %1763 = vst.msk [vmem:[%s2698_s10 + $0x10] sm:$0xff] %vm724_vm2, %v1155_v7 }
 0x554   : > { %2038 = vrcp.f32 %v1330_v8 }
 0x557   : > { %v1160_v11 = vpop.permute.xlu1 %1159 }
 0x561   : > { %v2039_v9 = vpop.eup %2038 }
 0x562   : > { %v1332_v10 = vmul.f32 %v2039_v9, %v2033_v61 }
 0x564   : > { %1767 = vst.msk [vmem:[%s2698_s10 + $0x18] sm:$0xff] %vm724_vm2, %v1332_v10 }
 0x588   : > { %v976_v12 = vpop.xlane.xlu1 %975 }
 0x589   : > { %2040 = vrcp.f32 %v976_v12 }
 0x58c   : > { %v1337_v15 = vpop.permute.xlu1 %1336 }
 0x596   : > { %v2041_v13 = vpop.eup %2040 }
 0x597   : > { %v978_v14 = vmul.f32 %v2041_v13, %v2035_v2 }
 0x599   : > { %1759 = vst.msk [vmem:[%s2698_s10 + $0x8] sm:$0xff] %vm724_vm2, %v978_v14  ;;  %1863 = vmatmul.mubr.msk.f32.vlgmr.msra.gmra.mxu1 %vm724_vm2, %v978_v14 }
 0x59a   : > { %1871 = vmatpush3.msra.mxu1 %v1160_v11  ;;  %1872 = vmatprep.mubr.msk.f32.mxu1 %vm2364_vm0, %v2363_v0 }
 0x59b   : > { %1880 = vmatprep.subr.mxu1 %v2363_v0 }
 0x59d   : > { %1873 = vmatmul.mubr.msk.f32.vlgmr.msra.gmra.mxu1 %vm724_vm2, %v1155_v7 }
 0x59e   : > { %1881 = vmatpush3.msra.mxu1 %v1337_v15  ;;  %1882 = vmatprep.mubr.msk.f32.mxu1 %vm2364_vm0, %v2363_v0 }
 0x5a1   : > { %1883 = vmatmul.mubr.msk.f32.vlgmr.msra.gmra.mxu1 %vm724_vm2, %v1332_v10 }
 0x659   : > { %v1054_v19 = vpop.f32.mrf.mxu1 }
 0x65a   : > { %1059 = vrot.lane.b32.xlu0 %v1054_v19, %s2368_s3 }
 0x65b   : > { %v1864_v21 = vpop.f32.mrf.mxu1 }
 0x65d   : > { %v1231_v22 = vpop.f32.mrf.mxu1 }
 0x65e   : > { %1236 = vrot.lane.b32.xlu1 %v1231_v22, %s2369_s23 }
 0x65f   : > { %v1874_v23 = vpop.f32.mrf.mxu1 }
 0x661   : > { %v1408_v24 = vpop.f32.mrf.mxu1 }
 0x662   : > { %1413 = vrot.lane.b32.xlu0 %v1408_v24, %s2370_s16 }
 0x663   : > { %v1884_v25 = vpop.f32.mrf.mxu1 }
 0x6cc   : > { %v1060_v26 = vpop.permute.xlu0 %1059 }
 0x6cd   : > { %1063 = vst.msk [vmem:[#allocation4] sm:$0xff] %vm1062_vm3, %v1060_v26 }
 0x6d0   : > { %v1237_v27 = vpop.permute.xlu1 %1236 }
 0x6d1   : > { %1240 = vst.msk [vmem:[#allocation4] sm:$0xff] %vm1239_vm4, %v1237_v27 }
 0x6d4   : > { %v1414_v0 = vpop.permute.xlu0 %1413 }
 0x6d5   : > { %1417 = vst.msk [vmem:[#allocation4] sm:$0xff] %vm1416_vm5, %v1414_v0 }
 0x6dc   : > { %v1418_v28 = vld [vmem:[#allocation4] sm:$0xff] }
 0x6dd   : > { %1894 = vmatmul.mubr.msk.f32.vlgmr.msra.gmra.mxu0 %vm489_vm1, %v1418_v28 }
 0x6de   : > { %2243 = shalt.err (!%p2240_p4)
}
 0x6df   : > { %s2244_s12 = scalar_lea.hbm %s2749_s15, 512  ;;  %s2248_s18 = scalar_lea.hbm %s2841_s8, 1024 }
 0x6e0   : > { %p2245_p8 = scmp.ne.s32.totalorder %s2749_s15, %s2244_s12  ;;  %p2249_p0 = scmp.lt.s32.totalorder %s2749_s15, %s2841_s8 }
 0x6e1   : > { %p2250_p13 = scmp.lt.s32.totalorder %s2248_s18, %s2244_s12 }
 0x6e2   : > { %p2246_p6 = pnand %p2245_p8, %p2889_p12 }
 0x6e3   : > { %p2251_p9 = por %p2250_p13, %p2249_p0 }
 0x6e4   : > { %p2247_p3 = pneg %p2246_p6 }
 0x6e6   : > { %p2252_p11 = pnand %p2251_p9, %p2247_p3 }
 0x6e8   : > { %2255 = shalt.err (!%p2252_p11)
}
 0x6e9   : > { %s2372_s10 = smov 128   ;;  %s2373_s23 = smov 256  }
 0x6ea   : > { %1919 = dma.vmem_to_hbm [thread:$0]  (%p2889_p12), %s2752_s27, 512, %s2749_s15, %s1503_s17, %s2372_s10, %s2373_s23, %s2368_s3  }
 0x6eb   : > { %s472_s16 = scalar_lea.vmem [#allocation17], %s2614_s22  ;;  %s2784_s24 = scalar_lea.hbm %s2840_s7, %s1772_s5 }
 0x6ec   : > { %s1517_s20 = sshll.u32 %s472_s16, 4  ;;  %s1498_s4 = scalar_lea.sflag [#allocation7], %s2611_s26  ;;  %s2786_s20 = int_to_ptr.vmem [resolvable:$true] %s1517_s20 }
 0x6ed   : > { %s2256_s9 = scalar_lea.vmem %s2786_s20, 128  ;;  %s2374_s30 = smov [#allocation17]  }
 0x6ee   : > { %p2257_p2 = scmp.ne.s32.totalorder %s2786_s20, %s2256_s9  ;;  %s2260_s22 = sshll.u32 %s2374_s30, 4  ;;  %s2261_s22 = int_to_ptr.vmem [resolvable:$false] %s2260_s22 }
 0x6ef   : > { %s2262_s3 = scalar_lea.vmem %s2261_s22, 256  ;;  %p2263_p1 = scmp.lt.s32.totalorder %s2786_s20, %s2261_s22 }
 0x6f0   : > { %p2258_p5 = pnand %p2257_p2, %p2889_p12  ;;  %p2264_p7 = scmp.lt.s32.totalorder %s2262_s3, %s2256_s9 }
 0x6f2   : > { %p2259_p10 = pneg %p2258_p5  ;;  %p2265_p4 = por %p2264_p7, %p2263_p1 }
 0x6f4   : > { %p2266_p8 = pnand %p2265_p4, %p2259_p10 }
 0x79d   : > { %v1492_v29 = vpop.f32.mrf.mxu0 }
 0x79e   : > { %1496 = vst.msk [vmem:[%s472_s16] sm:$0xff] %vm489_vm1, %v1492_v29 }
 0x79f   : > { %v1895_v30 = vpop.f32.mrf.mxu0 }
 0x7a0   : > { %2269 = shalt.err (!%p2266_p8)
}
 0x7a1   : > { %s2270_s5 = scalar_lea.hbm %s2784_s24, 128  ;;  %s2274_s27 = scalar_lea.hbm %s2840_s7, 256 }
 0x7a2   : > { %p2271_p6 = scmp.ne.s32.totalorder %s2784_s24, %s2270_s5  ;;  %p2275_p13 = scmp.lt.s32.totalorder %s2784_s24, %s2840_s7 }
 0x7a3   : > { %p2276_p9 = scmp.lt.s32.totalorder %s2274_s27, %s2270_s5 }
 0x7a4   : > { %p2272_p3 = pnand %p2271_p6, %p2889_p12 }
 0x7a5   : > { %p2277_p11 = por %p2276_p9, %p2275_p13 }
 0x7a6   : > { %p2273_p0 = pneg %p2272_p3 }
 0x7a8   : > { %p2278_p2 = pnand %p2277_p11, %p2273_p0 }
 0x7aa   : > { %2281 = shalt.err (!%p2278_p2)
}
 0x7ab   : > { %1918 = dma.vmem_to_hbm [thread:$0]  (%p2889_p12), %s2786_s20, 128, %s2784_s24, %s1498_s4  }
 0x7ac PF: > { %s2890_s25 = sld [smem:[#allocation26_spill]] }
 0x7ad   : > { %s2891_s11 = sld [smem:[#allocation31_spill]] }
 0x7ae   : > { %s2892_s18 = sld [smem:[#allocation28_spill]] }
 0x7b2   : > { %s1545_s1 = sand.u32 1, %s2890_s25  }
 0x7b3   : > { %p2893_p5 = scmp.ne.s32.totalorder %s2891_s11, 0  ;;  %s1546_s14 = scalar_lea.sflag [#allocation7], %s1545_s1 }
 0x7b4   : > { %p2894_p10 = scmp.ge.s32.totalorder %s2892_s18, 2 }
 0x7b6   : > { %p1946_p1 = pnand %p2894_p10, %p2893_p5 }
 0x7b8   : > { %p1947_p7 = pneg %p1946_p1 }
 0x7ba   : > { %2323 = dma.done.wait (%p1947_p7), %s1546_s14, 128  }
 0x7bb   : > { %2325 = vsyncadd (%p1947_p7), %s1546_s14, 4294967168  ;;  %s1555_s10 = scalar_lea.sflag [#allocation19], %s1545_s1 }
 0x7bc   : > { %2327 = dma.done.wait (%p1947_p7), %s1555_s10, 512  }
 0x7bd   : > { %2329 = vsyncadd (%p1947_p7), %s1555_s10, 4294966784  ;;  %s33_s10 = sadd.s32 1, %s2892_s18   ;;  %s2895_s21 = sld [smem:[#allocation30_spill]] }
 0x7be   : > { %p30_p4 = scmp.ge.s32.totalorder %s33_s10, 4   ;;  %s2896_s30 = sld [smem:[#allocation27_spill]] }
 0x7bf   : > { %s2897_s9 = sld [smem:[#allocation29_spill]]  ;;  %s2898_s27 = smov %s2336_s28 }
 0x7c0   : > { %s2899_s28 = smov %s2340_s29  ;;  %32 = sbr.rel (!%p30_p4) target bundleno = 17 (0x11), region = 157 }
 0x7c3   : > { %s2900_s29 = smov %s2895_s21 }
 0x7c5   :  { %1560 = vsyncpa [#allocation6], 1 }
 0x7c6   :  { %1562 = vsyncpa [#allocation6 + $0x1], 1 }
 0x7c7   :  { %1563 = vsyncpa [#allocation9], 1 }
 0x7c8   :  { %1565 = vsyncpa [#allocation9 + $0x1], 1 }
 0x7c9   :  { %1566 = vsyncpa [#allocation12], 1 }
 0x7ca   :  { %1567 = vsyncpa [#allocation15], 1 }
 0x7cb   :  { %1568 = vsyncpa [#allocation7], 1 }
 0x7cc   :  { %1570 = vsyncpa [#allocation7 + $0x1], 1 }
 0x7cd   :  { %1571 = vsyncpa [#allocation19], 1 }
 0x7ce   :  { %1573 = vsyncpa [#allocation19 + $0x1], 1 }

</bundles_post_ra>
